<compile_context>
chip_gen: v7x
topology: tpu7x:2x2x1
jax: 0.10.0
libtpu: 0.0.40
codegen_flags: <defaults>
</compile_context>

<pallas_src>
import jax
import jax.numpy as jnp
from jax.experimental import pallas as pl
from jax.experimental.pallas import tpu as pltpu

_LANES = 128


# ---------------------------------------------------------------------------
# AReLU:  out = relu(x) * (1 + sigmoid(beta)) - relu(-x) * clamp(alpha, .01, .99)
#       == x * where(x > 0, beta_c, alpha_c)
# ---------------------------------------------------------------------------
def _arelu_kernel(alpha_ref, beta_ref, x_ref, o_ref):
    alpha = alpha_ref[0]                     # pre-clamped scalar (SMEM)
    beta = beta_ref[0]                       # pre-computed 1 + sigmoid (SMEM)
    xf = x_ref[...].astype(jnp.float32)
    o_ref[...] = (xf * jnp.where(xf > 0, beta, alpha)).astype(o_ref.dtype)


def arelu(x, alpha_param, beta_param):
    """Elementwise AReLU; keeps x's native dtype through HBM/VMEM (math in f32)."""
    orig_shape = x.shape
    dtype = x.dtype
    # Hoist scalar parameter transforms out of the kernel (kernel body = pure VPU work).
    alpha_c = jnp.clip(alpha_param, 0.01, 0.99).astype(jnp.float32)
    beta_c = (1.0 + jax.nn.sigmoid(beta_param)).astype(jnp.float32)

    flat = x.reshape(-1)
    n = flat.shape[0]
    itemsize = jnp.dtype(dtype).itemsize
    sub = max(8, 32 // itemsize)             # min sublane multiple: 8 f32, 16 bf16, 32 int8
    tile = sub * _LANES
    pad = (-n) % tile
    if pad:
        # No-op for this module's shapes (last dim is a multiple of 128); only tiny
        # alignment padding would ever be added for odd sizes.
        flat = jnp.pad(flat, (0, pad))
    rows = flat.shape[0] // _LANES
    x2d = flat.reshape(rows, _LANES)

    # ~2 MiB blocks -> in+out double-buffered footprint ~8 MiB: safe on v5e/v6e/v7x.
    tr = max(sub, ((2 << 20) // (_LANES * itemsize)) // sub * sub)
    tr = min(tr, rows)
    grid = (pl.cdiv(rows, tr),)

    out2d = pl.pallas_call(
        _arelu_kernel,
        out_shape=jax.ShapeDtypeStruct((rows, _LANES), dtype),
        grid_spec=pltpu.PrefetchScalarGridSpec(
            num_scalar_prefetch=0,
            grid=grid,
            in_specs=[
                pl.BlockSpec(memory_space=pltpu.MemorySpace.SMEM),   # alpha (1,)
                pl.BlockSpec(memory_space=pltpu.MemorySpace.SMEM),   # beta  (1,)
                pl.BlockSpec((tr, _LANES), lambda i: (i, 0)),        # x tile
            ],
            out_specs=pl.BlockSpec((tr, _LANES), lambda i: (i, 0)),
        ),
        compiler_params=pltpu.CompilerParams(
            dimension_semantics=("parallel",),      # shard blocks across v7x's 2 TCs
            vmem_limit_bytes=32 << 20,
        ),
    )(alpha_c, beta_c, x2d)

    out = out2d.reshape(-1)
    if pad:
        out = out[:n]
    return out.reshape(orig_shape)


# ---------------------------------------------------------------------------
# Single LSTM layer (PyTorch semantics, zero initial state), time-major input.
# ---------------------------------------------------------------------------
def _lstm_layer_kernel(x_ref, wih_ref, whh_ref, b_ref, h_seq_ref, h_scr, c_scr):
    H = h_scr.shape[-1]

    @pl.when(pl.program_id(0) == 0)
    def _():
        h_scr[...] = jnp.zeros_like(h_scr)
        c_scr[...] = jnp.zeros_like(c_scr)

    x_t = x_ref[0].astype(jnp.float32)                       # (B, D_in)
    h_prev = h_scr[...]
    gates = (jnp.dot(x_t, wih_ref[...], preferred_element_type=jnp.float32)
             + jnp.dot(h_prev, whh_ref[...], preferred_element_type=jnp.float32)
             + b_ref[...])                                   # (B, 4H); gate order i,f,g,o
    i = jax.nn.sigmoid(gates[:, 0:H])
    f = jax.nn.sigmoid(gates[:, H:2 * H])
    g = jnp.tanh(gates[:, 2 * H:3 * H])
    o = jax.nn.sigmoid(gates[:, 3 * H:4 * H])
    c_new = f * c_scr[...] + i * g
    h_new = o * jnp.tanh(c_new)
    c_scr[...] = c_new
    h_scr[...] = h_new
    h_seq_ref[0] = h_new.astype(h_seq_ref.dtype)


def lstm_layer(x_sbd, w_ih, w_hh, b):
    """x: (S, B, D) time-major; w_ih: (D, 4H); w_hh: (H, 4H); b: (1, 4H). Returns (S, B, H)."""
    S, B, D = x_sbd.shape
    H = w_hh.shape[0]
    return pl.pallas_call(
        _lstm_layer_kernel,
        out_shape=jax.ShapeDtypeStruct((S, B, H), x_sbd.dtype),
        grid_spec=pltpu.PrefetchScalarGridSpec(
            num_scalar_prefetch=0,
            grid=(S,),
            in_specs=[
                pl.BlockSpec((1, B, D), lambda t: (t, 0, 0)),      # x_t
                pl.BlockSpec((D, 4 * H), lambda t: (0, 0)),        # W_ih^T (resident)
                pl.BlockSpec((H, 4 * H), lambda t: (0, 0)),        # W_hh^T (resident)
                pl.BlockSpec((1, 4 * H), lambda t: (0, 0)),        # b_ih + b_hh
            ],
            out_specs=pl.BlockSpec((1, B, H), lambda t: (t, 0, 0)),
            scratch_shapes=[
                pltpu.VMEM((B, H), jnp.float32),                   # h state
                pltpu.VMEM((B, H), jnp.float32),                   # c state
            ],
        ),
        compiler_params=pltpu.CompilerParams(
            dimension_semantics=("arbitrary",),     # recurrence: sequential over time
        ),
    )(x_sbd, w_ih, w_hh, b)


# ---------------------------------------------------------------------------
# Single GRU layer (PyTorch semantics, zero initial state), time-major input.
# ---------------------------------------------------------------------------
def _gru_layer_kernel(x_ref, wih_ref, whh_ref, bih_ref, bhh_ref, h_seq_ref, h_scr):
    H = h_scr.shape[-1]

    @pl.when(pl.program_id(0) == 0)
    def _():
        h_scr[...] = jnp.zeros_like(h_scr)

    x_t = x_ref[0].astype(jnp.float32)                       # (B, D_in)
    h_prev = h_scr[...]
    gi = jnp.dot(x_t, wih_ref[...], preferred_element_type=jnp.float32) + bih_ref[...]
    gh = jnp.dot(h_prev, whh_ref[...], preferred_element_type=jnp.float32) + bhh_ref[...]
    r = jax.nn.sigmoid(gi[:, 0:H] + gh[:, 0:H])
    z = jax.nn.sigmoid(gi[:, H:2 * H] + gh[:, H:2 * H])
    n = jnp.tanh(gi[:, 2 * H:3 * H] + r * gh[:, 2 * H:3 * H])
    h_new = (1.0 - z) * n + z * h_prev
    h_scr[...] = h_new
    h_seq_ref[0] = h_new.astype(h_seq_ref.dtype)


def gru_layer(x_sbd, w_ih, w_hh, b_ih, b_hh):
    """x: (S, B, D); w_ih: (D, 3H); w_hh: (H, 3H); b_*: (1, 3H). Returns (S, B, H)."""
    S, B, D = x_sbd.shape
    H = w_hh.shape[0]
    return pl.pallas_call(
        _gru_layer_kernel,
        out_shape=jax.ShapeDtypeStruct((S, B, H), x_sbd.dtype),
        grid_spec=pltpu.PrefetchScalarGridSpec(
            num_scalar_prefetch=0,
            grid=(S,),
            in_specs=[
                pl.BlockSpec((1, B, D), lambda t: (t, 0, 0)),
                pl.BlockSpec((D, 3 * H), lambda t: (0, 0)),
                pl.BlockSpec((H, 3 * H), lambda t: (0, 0)),
                pl.BlockSpec((1, 3 * H), lambda t: (0, 0)),
                pl.BlockSpec((1, 3 * H), lambda t: (0, 0)),
            ],
            out_specs=pl.BlockSpec((1, B, H), lambda t: (t, 0, 0)),
            scratch_shapes=[pltpu.VMEM((B, H), jnp.float32)],      # h state
        ),
        compiler_params=pltpu.CompilerParams(
            dimension_semantics=("arbitrary",),
        ),
    )(x_sbd, w_ih, w_hh, b_ih, b_hh)


# ---------------------------------------------------------------------------
# Linear(H -> 1): lane reduction (avoids an N=1 MXU matmul).
# ---------------------------------------------------------------------------
def _linear_kernel(x_ref, w_ref, b_ref, o_ref):
    x = x_ref[...].astype(jnp.float32)                       # (N, H)
    w = w_ref[...]                                           # (1, H)
    o = jnp.sum(x * w, axis=-1, keepdims=True) + b_ref[0]    # (N, 1)
    o_ref[...] = o.astype(o_ref.dtype)


def linear_1out(x2d, w_row, b):
    """x2d: (N, H); w_row: (1, H); b: (1,).  Returns (N, 1)."""
    N, H = x2d.shape
    return pl.pallas_call(
        _linear_kernel,
        out_shape=jax.ShapeDtypeStruct((N, 1), x2d.dtype),
        grid_spec=pltpu.PrefetchScalarGridSpec(
            num_scalar_prefetch=0,
            grid=(1,),
            in_specs=[
                pl.BlockSpec((N, H), lambda i: (0, 0)),
                pl.BlockSpec((1, H), lambda i: (0, 0)),
                pl.BlockSpec(memory_space=pltpu.MemorySpace.SMEM),   # bias (1,)
            ],
            out_specs=pl.BlockSpec((N, 1), lambda i: (0, 0)),
        ),
        compiler_params=pltpu.CompilerParams(
            dimension_semantics=("arbitrary",),
        ),
    )(x2d, w_row, b)


# ---------------------------------------------------------------------------
# SegmentCritic forward
# ---------------------------------------------------------------------------
def segment_critic_forward(embedded_indices, lstm_params, gru_params,
                           lin_w, lin_b, arelu1, arelu2):
    """embedded_indices: (B, S, E) -> (B, S, 1), matching SegmentCritic.forward."""
    B, S, _ = embedded_indices.shape
    h = jnp.transpose(embedded_indices, (1, 0, 2))            # time-major (S, B, E)
    for (w_ih, w_hh, b) in lstm_params:                        # 4-layer LSTM
        h = lstm_layer(h, w_ih, w_hh, b)
    h = arelu(h, *arelu1)                                      # elementwise, layout-agnostic
    for (w_ih, w_hh, b_ih, b_hh) in gru_params:                # 2-layer GRU
        h = gru_layer(h, w_ih, w_hh, b_ih, b_hh)
    h = arelu(h, *arelu2)
    Hd = h.shape[-1]
    out = linear_1out(h.reshape(S * B, Hd), lin_w, lin_b)      # (S*B, 1)
    return jnp.transpose(out.reshape(S, B, 1), (1, 0, 2))      # back to batch-first


# ---------------------------------------------------------------------------
# Pure-JAX reference (for correctness check)
# ---------------------------------------------------------------------------
def _arelu_ref(x, alpha_param, beta_param):
    alpha = jnp.clip(alpha_param, 0.01, 0.99)
    beta = 1.0 + jax.nn.sigmoid(beta_param)
    return jnp.maximum(x, 0.0) * beta - jnp.maximum(-x, 0.0) * alpha


def _lstm_layer_ref(x_sbd, w_ih, w_hh, b):
    H = w_hh.shape[0]
    B = x_sbd.shape[1]

    def step(carry, x_t):
        h, c = carry
        gates = x_t @ w_ih + h @ w_hh + b[0]
        i = jax.nn.sigmoid(gates[:, 0:H])
        f = jax.nn.sigmoid(gates[:, H:2 * H])
        g = jnp.tanh(gates[:, 2 * H:3 * H])
        o = jax.nn.sigmoid(gates[:, 3 * H:4 * H])
        c = f * c + i * g
        h = o * jnp.tanh(c)
        return (h, c), h

    init = (jnp.zeros((B, H), jnp.float32), jnp.zeros((B, H), jnp.float32))
    _, hs = jax.lax.scan(step, init, x_sbd)
    return hs


def _gru_layer_ref(x_sbd, w_ih, w_hh, b_ih, b_hh):
    H = w_hh.shape[0]
    B = x_sbd.shape[1]

    def step(h, x_t):
        gi = x_t @ w_ih + b_ih[0]
        gh = h @ w_hh + b_hh[0]
        r = jax.nn.sigmoid(gi[:, 0:H] + gh[:, 0:H])
        z = jax.nn.sigmoid(gi[:, H:2 * H] + gh[:, H:2 * H])
        n = jnp.tanh(gi[:, 2 * H:3 * H] + r * gh[:, 2 * H:3 * H])
        h = (1.0 - z) * n + z * h
        return h, h

    _, hs = jax.lax.scan(step, jnp.zeros((B, H), jnp.float32), x_sbd)
    return hs


def segment_critic_reference(embedded_indices, lstm_params, gru_params,
                             lin_w, lin_b, arelu1, arelu2):
    h = jnp.transpose(embedded_indices, (1, 0, 2))
    for (w_ih, w_hh, b) in lstm_params:
        h = _lstm_layer_ref(h, w_ih, w_hh, b)
    h = _arelu_ref(h, *arelu1)
    for (w_ih, w_hh, b_ih, b_hh) in gru_params:
        h = _gru_layer_ref(h, w_ih, w_hh, b_ih, b_hh)
    h = _arelu_ref(h, *arelu2)
    out = h @ lin_w.T + lin_b[0]                               # (S, B, 1)
    return jnp.transpose(out, (1, 0, 2))


if __name__ == "__main__":
    key = jax.random.PRNGKey(0)
    B, S, E = 2, 8, 64              # batch, seq, d_model_caps
    H = 2 * E                        # LSTM/GRU hidden size = 128

    keys = jax.random.split(key, 32)
    kit = iter(keys)

    def unif(k, shape, scale):
        return jax.random.uniform(k, shape, jnp.float32, -scale, scale)

    scale = 1.0 / (H ** 0.5)

    # 4-layer LSTM (weights stored transposed: (D_in, 4H) / (H, 4H); biases combined).
    lstm_params = []
    for layer in range(4):
        d_in = E if layer == 0 else H
        w_ih = unif(next(kit), (d_in, 4 * H), scale)
        w_hh = unif(next(kit), (H, 4 * H), scale)
        b_ih = unif(next(kit), (1, 4 * H), scale)
        b_hh = unif(next(kit), (1, 4 * H), scale)
        lstm_params.append((w_ih, w_hh, b_ih + b_hh))

    # 2-layer GRU (biases kept separate — needed for the "n" gate).
    gru_params = []
    for layer in range(2):
        w_ih = unif(next(kit), (H, 3 * H), scale)
        w_hh = unif(next(kit), (H, 3 * H), scale)
        b_ih = unif(next(kit), (1, 3 * H), scale)
        b_hh = unif(next(kit), (1, 3 * H), scale)
        gru_params.append((w_ih, w_hh, b_ih, b_hh))

    lin_w = unif(next(kit), (1, H), scale)     # Linear(2E -> 1), weight as (1, H)
    lin_b = unif(next(kit), (1,), scale)

    arelu1 = (jnp.array([0.9], jnp.float32), jnp.array([2.0], jnp.float32))
    arelu2 = (jnp.array([0.9], jnp.float32), jnp.array([2.0], jnp.float32))

    x = jax.random.normal(next(kit), (B, S, E), jnp.float32)

    out = segment_critic_forward(x, lstm_params, gru_params, lin_w, lin_b, arelu1, arelu2)
    out = jax.block_until_ready(out)
    assert out.shape == (B, S, 1) and out.dtype == jnp.float32

    ref = segment_critic_reference(x, lstm_params, gru_params, lin_w, lin_b, arelu1, arelu2)
    # Loose tolerance: in-kernel MXU f32 matmul passes may differ slightly from the
    # XLA-compiled reference's default matmul precision.
    assert jnp.allclose(out, ref, atol=5e-2, rtol=5e-2), "mismatch vs reference"

    print("KERNEL_OK")
</pallas_src>

<mosaic_0001>
module attributes {stable_mosaic.version = 11 : i64} {
  func.func @_lstm_layer_kernel(%arg0: i32, %arg1: memref<1x2x64xf32, #tpu.memory_space<vmem>>, %arg2: memref<64x512xf32, #tpu.memory_space<vmem>>, %arg3: memref<128x512xf32, #tpu.memory_space<vmem>>, %arg4: memref<1x512xf32, #tpu.memory_space<vmem>>, %arg5: memref<1x2x128xf32, #tpu.memory_space<vmem>>, %arg6: memref<2x128xf32, #tpu.memory_space<vmem>>, %arg7: memref<2x128xf32, #tpu.memory_space<vmem>>) attributes {dimension_semantics = [#tpu.dimension_semantics<arbitrary>], iteration_bounds = array<i64: 8>, scalar_prefetch = 0 : i64, scratch_operands = 2 : i64, tpu.core_type = #tpu.core_type<tc>, window_params = [{transform_indices = @transform_0, window_bounds = array<i64: 1, 2, 64>}, {pipeline_mode = #tpu.pipeline_mode<synchronous>, transform_indices = @transform_1, window_bounds = array<i64: 64, 512>}, {pipeline_mode = #tpu.pipeline_mode<synchronous>, transform_indices = @transform_2, window_bounds = array<i64: 128, 512>}, {pipeline_mode = #tpu.pipeline_mode<synchronous>, transform_indices = @transform_3, window_bounds = array<i64: 1, 512>}, {transform_indices = @transform_4, window_bounds = array<i64: 1, 2, 128>}]} {
    %c0_i32 = arith.constant 0 : i32
    %0 = arith.cmpi eq, %arg0, %c0_i32 : i32
    %1 = arith.extui %0 : i1 to i32
    %c0_i32_0 = arith.constant 0 : i32
    %2 = arith.cmpi ne, %1, %c0_i32_0 : i32
    scf.if %2 {
      %cst_24 = arith.constant 0.000000e+00 : f32
      %45 = vector.broadcast %cst_24 : f32 to vector<2x128xf32>
      %c0_25 = arith.constant 0 : index
      %c0_26 = arith.constant 0 : index
      %46 = vector.load %arg6[%c0_25, %c0_26] : memref<2x128xf32, #tpu.memory_space<vmem>>, vector<2x128xf32>
      tpu.vector_store %arg6[%c0_25, %c0_26], %45 {strides = array<i32>} : memref<2x128xf32, #tpu.memory_space<vmem>>, vector<2x128xf32>,
      %cst_27 = arith.constant 0.000000e+00 : f32
      %47 = vector.broadcast %cst_27 : f32 to vector<2x128xf32>
      %c0_28 = arith.constant 0 : index
      %c0_29 = arith.constant 0 : index
      %48 = vector.load %arg7[%c0_28, %c0_29] : memref<2x128xf32, #tpu.memory_space<vmem>>, vector<2x128xf32>
      tpu.vector_store %arg7[%c0_28, %c0_29], %47 {strides = array<i32>} : memref<2x128xf32, #tpu.memory_space<vmem>>, vector<2x128xf32>,
    } else {
    }
    %c0 = arith.constant 0 : index
    %c0_1 = arith.constant 0 : index
    %c0_2 = arith.constant 0 : index
    %3 = vector.load %arg1[%c0, %c0_1, %c0_2] : memref<1x2x64xf32, #tpu.memory_space<vmem>>, vector<1x2x64xf32>
    %4 = vector.shape_cast %3 : vector<1x2x64xf32> to vector<2x64xf32>
    %c0_3 = arith.constant 0 : index
    %c0_4 = arith.constant 0 : index
    %5 = vector.load %arg6[%c0_3, %c0_4] : memref<2x128xf32, #tpu.memory_space<vmem>>, vector<2x128xf32>
    %c0_5 = arith.constant 0 : index
    %c0_6 = arith.constant 0 : index
    %6 = vector.load %arg2[%c0_5, %c0_6] : memref<64x512xf32, #tpu.memory_space<vmem>>, vector<64x512xf32>
    %cst = arith.constant dense<0.000000e+00> : vector<2x512xf32>
    %7 = tpu.matmul %4, %6, %cst {dimension_numbers = #tpu.dot_dimension_numbers<[1], [0], [0], [1], [0, 0, 1, 1], [], []>} : vector<2x64xf32>, vector<64x512xf32>, vector<2x512xf32> -> vector<2x512xf32>
    %c0_7 = arith.constant 0 : index
    %c0_8 = arith.constant 0 : index
    %8 = vector.load %arg3[%c0_7, %c0_8] : memref<128x512xf32, #tpu.memory_space<vmem>>, vector<128x512xf32>
    %cst_9 = arith.constant dense<0.000000e+00> : vector<2x512xf32>
    %9 = tpu.matmul %5, %8, %cst_9 {dimension_numbers = #tpu.dot_dimension_numbers<[1], [0], [0], [1], [0, 0, 1, 1], [], []>} : vector<2x128xf32>, vector<128x512xf32>, vector<2x512xf32> -> vector<2x512xf32>
    %10 = arith.addf %7, %9 : vector<2x512xf32>
    %c0_10 = arith.constant 0 : index
    %c0_11 = arith.constant 0 : index
    %11 = vector.load %arg4[%c0_10, %c0_11] : memref<1x512xf32, #tpu.memory_space<vmem>>, vector<1x512xf32>
    %12 = vector.broadcast %11 : vector<1x512xf32> to vector<2x512xf32>
    %13 = arith.addf %10, %12 : vector<2x512xf32>
    %14 = vector.extract_strided_slice %13 {offsets = [0, 0], sizes = [2, 128], strides = [1, 1]} : vector<2x512xf32> to vector<2x128xf32>
    %15 = arith.negf %14 : vector<2x128xf32>
    %16 = math.exp %15 : vector<2x128xf32>
    %cst_12 = arith.constant 1.000000e+00 : f32
    %17 = vector.broadcast %cst_12 : f32 to vector<2x128xf32>
    %18 = arith.addf %17, %16 : vector<2x128xf32>
    %19 = arith.divf %17, %18 : vector<2x128xf32>
    %20 = vector.extract_strided_slice %13 {offsets = [0, 128], sizes = [2, 128], strides = [1, 1]} : vector<2x512xf32> to vector<2x128xf32>
    %21 = arith.negf %20 : vector<2x128xf32>
    %22 = math.exp %21 : vector<2x128xf32>
    %cst_13 = arith.constant 1.000000e+00 : f32
    %23 = vector.broadcast %cst_13 : f32 to vector<2x128xf32>
    %24 = arith.addf %23, %22 : vector<2x128xf32>
    %25 = arith.divf %23, %24 : vector<2x128xf32>
    %26 = vector.extract_strided_slice %13 {offsets = [0, 256], sizes = [2, 128], strides = [1, 1]} : vector<2x512xf32> to vector<2x128xf32>
    %27 = math.tanh %26 : vector<2x128xf32>
    %28 = vector.extract_strided_slice %13 {offsets = [0, 384], sizes = [2, 128], strides = [1, 1]} : vector<2x512xf32> to vector<2x128xf32>
    %29 = arith.negf %28 : vector<2x128xf32>
    %30 = math.exp %29 : vector<2x128xf32>
    %cst_14 = arith.constant 1.000000e+00 : f32
    %31 = vector.broadcast %cst_14 : f32 to vector<2x128xf32>
    %32 = arith.addf %31, %30 : vector<2x128xf32>
    %33 = arith.divf %31, %32 : vector<2x128xf32>
    %c0_15 = arith.constant 0 : index
    %c0_16 = arith.constant 0 : index
    %34 = vector.load %arg7[%c0_15, %c0_16] : memref<2x128xf32, #tpu.memory_space<vmem>>, vector<2x128xf32>
    %35 = arith.mulf %25, %34 : vector<2x128xf32>
    %36 = arith.mulf %19, %27 : vector<2x128xf32>
    %37 = arith.addf %35, %36 : vector<2x128xf32>
    %38 = math.tanh %37 : vector<2x128xf32>
    %39 = arith.mulf %33, %38 : vector<2x128xf32>
    %c0_17 = arith.constant 0 : index
    %c0_18 = arith.constant 0 : index
    %40 = vector.load %arg7[%c0_17, %c0_18] : memref<2x128xf32, #tpu.memory_space<vmem>>, vector<2x128xf32>
    tpu.vector_store %arg7[%c0_17, %c0_18], %37 {strides = array<i32>} : memref<2x128xf32, #tpu.memory_space<vmem>>, vector<2x128xf32>,
    %c0_19 = arith.constant 0 : index
    %c0_20 = arith.constant 0 : index
    %41 = vector.load %arg6[%c0_19, %c0_20] : memref<2x128xf32, #tpu.memory_space<vmem>>, vector<2x128xf32>
    tpu.vector_store %arg6[%c0_19, %c0_20], %39 {strides = array<i32>} : memref<2x128xf32, #tpu.memory_space<vmem>>, vector<2x128xf32>,
    %c0_21 = arith.constant 0 : index
    %c0_22 = arith.constant 0 : index
    %c0_23 = arith.constant 0 : index
    %42 = vector.load %arg5[%c0_21, %c0_22, %c0_23] : memref<1x2x128xf32, #tpu.memory_space<vmem>>, vector<1x2x128xf32>
    %43 = vector.shape_cast %42 : vector<1x2x128xf32> to vector<2x128xf32>
    %44 = vector.shape_cast %39 : vector<2x128xf32> to vector<1x2x128xf32>
    tpu.vector_store %arg5[%c0_21, %c0_22, %c0_23], %44 {strides = array<i32>} : memref<1x2x128xf32, #tpu.memory_space<vmem>>, vector<1x2x128xf32>,
    return
  }
  func.func @transform_0(%arg0: i32) -> (i32, i32, i32) {
    %c0_i32 = arith.constant 0 : i32
    %c0_i32_0 = arith.constant 0 : i32
    %c0_i32_1 = arith.constant 0 : i32
    return %arg0, %c0_i32, %c0_i32_0 : i32, i32, i32
  }
  func.func @transform_1(%arg0: i32) -> (i32, i32) {
    %c0_i32 = arith.constant 0 : i32
    %c0_i32_0 = arith.constant 0 : i32
    %c0_i32_1 = arith.constant 0 : i32
    return %c0_i32, %c0_i32_0 : i32, i32
  }
  func.func @transform_2(%arg0: i32) -> (i32, i32) {
    %c0_i32 = arith.constant 0 : i32
    %c0_i32_0 = arith.constant 0 : i32
    %c0_i32_1 = arith.constant 0 : i32
    return %c0_i32, %c0_i32_0 : i32, i32
  }
  func.func @transform_3(%arg0: i32) -> (i32, i32) {
    %c0_i32 = arith.constant 0 : i32
    %c0_i32_0 = arith.constant 0 : i32
    %c0_i32_1 = arith.constant 0 : i32
    return %c0_i32, %c0_i32_0 : i32, i32
  }
  func.func @transform_4(%arg0: i32) -> (i32, i32, i32) {
    %c0_i32 = arith.constant 0 : i32
    %c0_i32_0 = arith.constant 0 : i32
    %c0_i32_1 = arith.constant 0 : i32
    return %arg0, %c0_i32, %c0_i32_0 : i32, i32, i32
  }
}

</mosaic_0001>

<bundles_post_ra>
// kernel: tpu_custom_call.1
= control target key start
LH: loop header
LB: loop body
LE: loop exit
PB: predicated region body
PF: predicated region fallthrough
CT: control target
= control target key end

     0   :  { %9 = vsyncpa [#allocation5], 0  ;;  %s1428_s0 = inlined_call_operand.hbm [shape: f32[8,2,64], index: 0, kind: input, shape index: {}]   ;;  %s1429_s1 = inlined_call_operand.hbm [shape: f32[64,512], index: 1, kind: input, shape index: {}]   ;;  %s1430_s2 = inlined_call_operand.hbm [shape: f32[128,512], index: 2, kind: input, shape index: {}]   ;;  %s1431_s3 = inlined_call_operand.vmem [shape: f32[1,512], index: 3, kind: input, shape index: {}]   ;;  %s1432_s4 = inlined_call_operand.hbm [shape: f32[8,2,128], index: 4, kind: output, shape index: {}]  }
   0x1   :  { %11 = vsyncpa [#allocation5 + $0x1], 0 }
   0x2   :  { %12 = vsyncpa [#allocation8], 0 }
   0x3   :  { %13 = vsyncpa [#allocation6], 0 }
   0x4   :  { %15 = vsyncpa [#allocation6 + $0x1], 0  ;;  %s1191_s15 = smov 0   ;;  %s1193_s16 = smov 0  }
   0x5   :  { %s1195_s17 = smov 0   ;;  %s1197_s18 = smov 0  }
   0x6 LB: > { %s1212_s19 = sadd.s32 4294967295, %s1156_s18   ;;  %s791_s20 = sadd.s32 4294967294, %s1156_s18   ;;  %s1156_s18 = sphi %s1197_s18, %s1452_s18   ;;  %s1152_s17 = sphi %s1195_s17, %s1451_s17   ;;  %s1148_s16 = sphi %s1193_s16, %s1450_s16   ;;  %s1144_s15 = sphi %s1191_s15, %s1449_s15  }
   0x7   : > { %p41_p0 = scmp.ne.s32.totalorder %s1148_s16, %s1144_s15  ;;  %p1433_p1 = scmp.eq.s32.totalorder %s1212_s19, 0 }
   0x8   : > { %p134_p3 = scmp.eq.s32.totalorder %s791_s20, 7  ;;  %p792_p5 = scmp.ge.s32.totalorder %s1156_s18, 1 }
   0x9   : > { %p1221_p4 = por %p1433_p1, %p41_p0  ;;  %p141_p7 = scmp.lt.s32.totalorder %s1156_s18, 9 }
   0xa   : > { %p1226_p6 = por %p134_p3, %p41_p0  ;;  %s1158_s24 = smov [#allocation7]  }
   0xb   : > { %s1436_s21 = scalar_select %p1221_p4, 1, 0 }
   0xc   : > { %s1437_s22 = scalar_select %p1226_p6, 1, 0 }
   0xd   : > { %p1232_p9 = pnand %p792_p5, %p141_p7  ;;  %s153_s25 = sshll.u32 %s1158_s24, 4  ;;  %s154_s25 = int_to_ptr.vmem [resolvable:$true] %s153_s25 }
   0xe   : > { %s1159_s27 = smov [#allocation9]   ;;  %s1000_s5 = scalar_lea.hbm %s1429_s1, 4096 }
   0xf   : > { %s1438_s23 = scalar_select %p1232_p9, 1, 0 }
  0x10   : > { %p925_p10 = pneg %p1232_p9  ;;  %s166_s28 = sshll.u32 %s1159_s27, 4  ;;  %s1244_s28 = int_to_ptr.vmem [resolvable:$true] %s166_s28 }
  0x11   : > { %p1001_p12 = scmp.ne.s32.totalorder %s1429_s1, %s1000_s5  ;;  %p1007_p5 = scmp.lt.u32.totalorder %s1000_s5, %s1429_s1 }
  0x12   : > { %p1240_p11 = pnand %p925_p10, %p1433_p1 }
  0x14   : > { %p1002_p13 = pneg %p1240_p11 }
  0x16   : > { %p1003_p0 = pnand %p1002_p13, %p1001_p12 }
  0x18   : > { %p1004_p3 = pneg %p1003_p0 }
  0x1a   : > { %p1009_p7 = pnand %p1007_p5, %p1004_p3 }
  0x1c   : > { %1012 = shalt.err (!%p1009_p7)
}
  0x1d   : > { %s1013_s10 = scalar_lea.vmem %s154_s25, 4096  ;;  %p1021_p2 = scmp.lt.s32.totalorder %s154_s25, %s154_s25 }
  0x1e   : > { %p1014_p10 = scmp.ne.s32.totalorder %s154_s25, %s1013_s10  ;;  %p1022_p6 = scmp.lt.s32.totalorder %s1013_s10, %s1013_s10 }
  0x20   : > { %p1016_p8 = pnand %p1014_p10, %p1002_p13  ;;  %p1023_p4 = por %p1022_p6, %p1021_p2 }
  0x22   : > { %p1017_p1 = pneg %p1016_p8 }
  0x24   : > { %p1024_p9 = pnand %p1023_p4, %p1017_p1 }
  0x26   : > { %1027 = shalt.err (!%p1024_p9)
}
  0x27   : > { %s1160_s11 = smov 512   ;;  %s1161_s12 = smov 32  }
  0x28   : > { %928 = dma.hbm_to_vmem [thread:$0]  (!%p1240_p11), %s1429_s1, 4096, %s154_s25, [#allocation8], %s1160_s11, %s1160_s11, %s1161_s12  }
  0x29   : > { %s1028_s27 = scalar_lea.hbm %s1430_s2, 8192 }
  0x2a   : > { %p1029_p8 = scmp.ne.s32.totalorder %s1430_s2, %s1028_s27  ;;  %p1035_p4 = scmp.lt.u32.totalorder %s1028_s27, %s1430_s2 }
  0x2c   : > { %p1031_p1 = pnand %p1029_p8, %p1002_p13 }
  0x2e   : > { %p1032_p2 = pneg %p1031_p1 }
  0x30   : > { %p1037_p6 = pnand %p1035_p4, %p1032_p2 }
  0x32   : > { %1040 = shalt.err (!%p1037_p6)
}
  0x33   : > { %s1041_s25 = scalar_lea.vmem %s1244_s28, 8192  ;;  %p1049_p3 = scmp.lt.s32.totalorder %s1244_s28, %s1244_s28 }
  0x34   : > { %p1042_p9 = scmp.ne.s32.totalorder %s1244_s28, %s1041_s25  ;;  %p1050_p5 = scmp.lt.s32.totalorder %s1041_s25, %s1041_s25 }
  0x36   : > { %p1044_p12 = pnand %p1042_p9, %p1002_p13  ;;  %p1051_p7 = por %p1050_p5, %p1049_p3 }
  0x38   : > { %p1045_p0 = pneg %p1044_p12 }
  0x3a   : > { %p1052_p10 = pnand %p1051_p7, %p1045_p0 }
  0x3c   : > { %1055 = shalt.err (!%p1052_p10)
}
  0x3d   : > { %931 = dma.hbm_to_vmem [thread:$0]  (!%p1240_p11), %s1430_s2, 8192, %s1244_s28, [#allocation8], %s1160_s11, %s1160_s11, %s1161_s12  }
  0x3e   : > { %s1294_s9 = sadd.s32 1, %s1156_s18   ;;  %s28_s26 = sadd.s32 1, %s1152_s17 }
  0x3f   : > { %s25_s10 = ssub.s32 %s1156_s18, %s1294_s9  ;;  %p35_p13 = scmp.ne.s32.totalorder %s1152_s17, %s1148_s16 }
  0x40   : > { %p26_p8 = scmp.eq.s32.totalorder %s25_s10, 0  ;;  %p36_p1 = scmp.eq.s32.totalorder %s1156_s18, 0 }
  0x41   : > { %p1440_p2 = scmp.eq.s32.totalorder %s1212_s19, 7  ;;  %p942_p6 = scmp.lt.s32.totalorder %s1156_s18, 8 }
  0x42   : > { %s1310_s14 = scalar_select %p26_p8, %s1152_s17, %s28_s26  }
  0x43   : > { %p1304_p4 = por %p1440_p2, %p35_p13  ;;  %p37_p9 = por %p36_p1, %p35_p13 }
  0x44   : > { %s183_s20 = sand.u32 1, %s1152_s17   ;;  %s797_s28 = sshll.u32 %s1156_s18, 5 }
  0x45   : > { %s796_s24 = sshll.u32 %s183_s20, 1  ;;  %s1317_s27 = scalar_lea.hbm %s1428_s0, %s797_s28 }
  0x46   : > { %s187_s29 = scalar_lea.vmem [#allocation4], %s796_s24  ;;  %p1321_p11 = pnand %p942_p6, %p37_p9 }
  0x47   : > { %s194_s30 = sshll.u32 %s187_s29, 4  ;;  %s184_s6 = scalar_lea.sflag [#allocation5], %s183_s20  ;;  %s1319_s30 = int_to_ptr.vmem [resolvable:$true] %s194_s30 }
  0x48   : > { %s1056_s25 = scalar_lea.hbm %s1317_s27, 32  ;;  %p1058_p0 = pneg %p1321_p11 }
  0x49   : > { %p1057_p12 = scmp.ne.s32.totalorder %s1317_s27, %s1056_s25  ;;  %s1061_s26 = scalar_lea.hbm %s1428_s0, 256 }
  0x4a   : > { %p1062_p7 = scmp.lt.u32.totalorder %s1317_s27, %s1428_s0  ;;  %p1063_p10 = scmp.lt.u32.totalorder %s1061_s26, %s1056_s25 }
  0x4b   : > { %p1059_p3 = pnand %p1058_p0, %p1057_p12  ;;  %p1065_p8 = scmp.lt.u32.totalorder %s1056_s25, %s1317_s27 }
  0x4c   : > { %p1064_p13 = por %p1063_p10, %p1062_p7 }
  0x4d   : > { %p1060_p5 = pneg %p1059_p3 }
  0x4e   : > { %p1066_p1 = por %p1065_p8, %p1064_p13 }
  0x50   : > { %p1067_p2 = pnand %p1066_p1, %p1060_p5 }
  0x52   : > { %1070 = shalt.err (!%p1067_p2)
}
  0x53   : > { %s1071_s20 = scalar_lea.vmem %s1319_s30, 32  ;;  %s1162_s28 = smov [#allocation4]  }
  0x54   : > { %p1072_p6 = scmp.ne.s32.totalorder %s1319_s30, %s1071_s20  ;;  %s1076_s11 = sshll.u32 %s1162_s28, 4  ;;  %s1077_s11 = int_to_ptr.vmem [resolvable:$false] %s1076_s11 }
  0x55   : > { %s1078_s12 = scalar_lea.vmem %s1077_s11, 64  ;;  %p1079_p3 = scmp.lt.s32.totalorder %s1319_s30, %s1077_s11 }
  0x56   : > { %p1074_p9 = pnand %p1072_p6, %p1058_p0  ;;  %p1080_p7 = scmp.lt.s32.totalorder %s1078_s12, %s1071_s20 }
  0x58   : > { %p1075_p12 = pneg %p1074_p9  ;;  %p1081_p10 = por %p1080_p7, %p1079_p3 }
  0x5a   : > { %p1082_p13 = pnand %p1081_p10, %p1075_p12 }
  0x5c   : > { %1085 = shalt.err (!%p1082_p13)
}
  0x5d   : > { %935 = dma.hbm_to_vmem [thread:$0]  (!%p1321_p11), %s1317_s27, 32, %s1319_s30, %s184_s6  }
  0x5e   : > { %p1443_p5 = scmp.ne.s32.totalorder %s1438_s23, 0 }
  0x5f   : > { %s1353_s29 = sand.u32 (!%p1443_p5), 1, %s1148_s16   ;;  %p1444_p0 = scmp.ne.s32.totalorder (!%p1443_p5), %s1436_s21, 0 }
  0x60   : > { %203 = sbr.rel (%p1443_p5) target bundleno = 440 (0x1b8), region = 36  ;;  %s799_s25 = sshll.u32 (!%p1443_p5), %s1353_s29, 1 }
  0x61   : > { %s206_s7 = scalar_lea.sflag (!%p1443_p5), [#allocation5], %s1353_s29  ;;  %s1357_s8 = scalar_lea.vmem (!%p1443_p5), [#allocation4], %s799_s25 }
  0x67   : > { %1131 = dma.done.wait (%p1444_p0), %s206_s7, 32  }
  0x68   : > { %1133 = vsyncadd (%p1444_p0), %s206_s7, 4294967264  ;;  %p1445_p11 = scmp.eq.s32.totalorder %s1212_s19, 0 }
  0x6a   : > { %1135 = dma.done.wait (%p1445_p11), [#allocation8], 12288   ;;  %p1446_p8 = pmov %p1445_p11 }
  0x6b   : > { %s1367_s23 = scalar_lea.vmem [#allocation10], %s799_s25  ;;  %p1447_p1 = scmp.ne.s32.totalorder %s1212_s19, 0 }
  0x6c   : > { %1137 = vsyncadd (%p1446_p8), [#allocation8], 4294955008  ;;  %v1163_v0 = vmov (!%p1447_p1), 0.0  }
  0x6d   : > { %245 = sbr.rel (%p1447_p1) target bundleno = 116 (0x74), region = 52  ;;  %246 = vst [vmem:[#allocation2] sm:$0x3] (!%p1447_p1), %v1163_v0  ;;  %247 = vst [vmem:[#allocation3] sm:$0x3] (!%p1447_p1), %v1163_v0 }
  0x74 PF: > { %v283_v1 = vld [vmem:[#allocation9 + $0x8] sm:$0xff]  ;;  %v285_v3 = vld [vmem:[#allocation9 + $0x18] sm:$0xff]  ;;  %v282_v6 = vld [vmem:[#allocation9] sm:$0xff]  ;;  %v1164_v8 = vmov 0.0   ;;  %vm488_vm0 = vcmask 523264   ;;  %s810_s30 = sshll.u32 %s1212_s19, 5 }
  0x75   : > { %v287_v2 = vld [vmem:[#allocation9 + $0x28] sm:$0xff]  ;;  %v289_v5 = vld [vmem:[#allocation9 + $0x38] sm:$0xff]  ;;  %v286_v7 = vld [vmem:[#allocation9 + $0x20] sm:$0xff]  ;;  %410 = vmatprep.mubr.f32.mxu0 %v1164_v8  ;;  %481 = vmatprep.mubr.f32.mxu1 %v1164_v8  ;;  %s702_s5 = sshll.u32 %s1367_s23, 4  ;;  %s1384_s10 = scalar_lea.hbm %s1432_s4, %s810_s30  ;;  %s1386_s5 = int_to_ptr.vmem [resolvable:$true] %s702_s5 }
  0x76   : > { %v813_v4 = vpack.c.bf16 %v287_v2, %v283_v1  ;;  %v845_v9 = vpack.c.bf16 %v289_v5, %v285_v3  ;;  %v815_v10 = vpack.c.bf16 %v286_v7, %v282_v6  ;;  %v284_v11 = vld [vmem:[#allocation9 + $0x10] sm:$0xff]  ;;  %v291_v13 = vld [vmem:[#allocation9 + $0x48] sm:$0xff]  ;;  %v293_v16 = vld [vmem:[#allocation9 + $0x58] sm:$0xff]  ;;  %s689_s24 = scalar_lea.sflag [#allocation6], %s1353_s29  ;;  %s1086_s20 = scalar_lea.vmem %s1386_s5, 32 }
  0x77   : > { %v288_v12 = vld [vmem:[#allocation9 + $0x30] sm:$0xff]  ;;  %v295_v15 = vld [vmem:[#allocation9 + $0x68] sm:$0xff]  ;;  %v297_v17 = vld [vmem:[#allocation9 + $0x78] sm:$0xff]  ;;  %p1087_p2 = scmp.ne.s32.totalorder %s1386_s5, %s1086_s20  ;;  %s1165_s19 = smov [#allocation10]  }
  0x78   : > { %814 = vmatprep.subr.bf16.mxu0 %v813_v4  ;;  %v847_v14 = vpack.c.bf16 %v288_v12, %v284_v11  ;;  %846 = vmatprep.subr.bf16.mxu1 %v845_v9  ;;  %v817_v18 = vpack.c.bf16 %v295_v15, %v291_v13  ;;  %v849_v19 = vpack.c.bf16 %v297_v17, %v293_v16  ;;  %v290_v20 = vld [vmem:[#allocation9 + $0x40] sm:$0xff]  ;;  %v292_v22 = vld [vmem:[#allocation9 + $0x50] sm:$0xff]  ;;  %v299_v25 = vld [vmem:[#allocation9 + $0x88] sm:$0xff]  ;;  %s1090_s28 = sshll.u32 %s1165_s19, 4  ;;  %s1091_s28 = int_to_ptr.vmem [resolvable:$false] %s1090_s28 }
  0x79   : > { %816 = vmatpush1.bf16.msra.mxu0 %v815_v10  ;;  %v294_v21 = vld [vmem:[#allocation9 + $0x60] sm:$0xff]  ;;  %v296_v24 = vld [vmem:[#allocation9 + $0x70] sm:$0xff]  ;;  %v303_v26 = vld [vmem:[#allocation9 + $0xa8] sm:$0xff]  ;;  %p1088_p6 = pnand %p1087_p2, %p1304_p4  ;;  %s1092_s11 = scalar_lea.vmem %s1091_s28, 64 }
  0x7a   : > { %848 = vmatpush1.bf16.msra.mxu1 %v847_v14  ;;  %v819_v23 = vpack.c.bf16 %v294_v21, %v290_v20  ;;  %818 = vmatprep.subr.bf16.mxu0 %v817_v18  ;;  %v851_v27 = vpack.c.bf16 %v296_v24, %v292_v22  ;;  %v821_v28 = vpack.c.bf16 %v303_v26, %v299_v25  ;;  %v301_v29 = vld [vmem:[#allocation9 + $0x98] sm:$0xff]  ;;  %v298_v31 = vld [vmem:[#allocation9 + $0x80] sm:$0xff]  ;;  %v300_v34 = vld [vmem:[#allocation9 + $0x90] sm:$0xff]  ;;  %p1093_p12 = scmp.lt.s32.totalorder %s1386_s5, %s1091_s28  ;;  %p1094_p3 = scmp.lt.s32.totalorder %s1092_s11, %s1086_s20 }
  0x7b   : > { %850 = vmatprep.subr.bf16.mxu1 %v849_v19  ;;  %v305_v30 = vld [vmem:[#allocation9 + $0xb8] sm:$0xff]  ;;  %v302_v33 = vld [vmem:[#allocation9 + $0xa0] sm:$0xff]  ;;  %v304_v35 = vld [vmem:[#allocation9 + $0xb0] sm:$0xff]  ;;  %p1089_p9 = pneg %p1088_p6 }
  0x7c   : > { %v853_v32 = vpack.c.bf16 %v305_v30, %v301_v29  ;;  %v823_v36 = vpack.c.bf16 %v302_v33, %v298_v31  ;;  %v307_v37 = vld [vmem:[#allocation9 + $0xc8] sm:$0xff]  ;;  %v309_v39 = vld [vmem:[#allocation9 + $0xd8] sm:$0xff]  ;;  %v855_v40 = vpack.c.bf16 %v304_v35, %v300_v34  ;;  %v306_v43 = vld [vmem:[#allocation9 + $0xc0] sm:$0xff]  ;;  %p1095_p7 = por %p1094_p3, %p1093_p12 }
  0x7d   : > { %820 = vmatpush1.bf16.msra.mxu0 %v819_v23  ;;  %v311_v38 = vld [vmem:[#allocation9 + $0xe8] sm:$0xff]  ;;  %v313_v42 = vld [vmem:[#allocation9 + $0xf8] sm:$0xff]  ;;  %v310_v44 = vld [vmem:[#allocation9 + $0xe0] sm:$0xff] }
  0x7e   : > { %852 = vmatpush1.bf16.msra.mxu1 %v851_v27  ;;  %822 = vmatprep.subr.bf16.mxu0 %v821_v28  ;;  %v825_v41 = vpack.c.bf16 %v311_v38, %v307_v37  ;;  %v857_v45 = vpack.c.bf16 %v313_v42, %v309_v39  ;;  %v308_v46 = vld [vmem:[#allocation9 + $0xd0] sm:$0xff]  ;;  %v315_v48 = vld [vmem:[#allocation9 + $0x108] sm:$0xff]  ;;  %v317_v50 = vld [vmem:[#allocation9 + $0x118] sm:$0xff]  ;;  %v827_v52 = vpack.c.bf16 %v310_v44, %v306_v43  ;;  %p1096_p10 = pnand %p1095_p7, %p1089_p9 }
  0x7f   : > { %854 = vmatprep.subr.bf16.mxu1 %v853_v32  ;;  %v312_v47 = vld [vmem:[#allocation9 + $0xf0] sm:$0xff]  ;;  %v319_v49 = vld [vmem:[#allocation9 + $0x128] sm:$0xff]  ;;  %v321_v51 = vld [vmem:[#allocation9 + $0x138] sm:$0xff] }
  0x80   : > { %v859_v53 = vpack.c.bf16 %v312_v47, %v308_v46  ;;  %v829_v54 = vpack.c.bf16 %v319_v49, %v315_v48  ;;  %v314_v55 = vld [vmem:[#allocation9 + $0x100] sm:$0xff]  ;;  %v316_v57 = vld [vmem:[#allocation9 + $0x110] sm:$0xff]  ;;  %v861_v58 = vpack.c.bf16 %v321_v51, %v317_v50  ;;  %v323_v60 = vld [vmem:[#allocation9 + $0x148] sm:$0xff] }
  0x81   : > { %824 = vmatpush1.bf16.msra.mxu0 %v823_v36  ;;  %v318_v56 = vld [vmem:[#allocation9 + $0x120] sm:$0xff]  ;;  %v320_v59 = vld [vmem:[#allocation9 + $0x130] sm:$0xff]  ;;  %v327_v61 = vld [vmem:[#allocation9 + $0x168] sm:$0xff] }
  0x82   : > { %856 = vmatpush1.bf16.msra.mxu1 %v855_v40  ;;  %826 = vmatprep.subr.bf16.mxu0 %v825_v41  ;;  %v325_v62 = vld [vmem:[#allocation9 + $0x158] sm:$0xff]  ;;  %v831_v0 = vpack.c.bf16 %v318_v56, %v314_v55  ;;  %v863_v1 = vpack.c.bf16 %v320_v59, %v316_v57  ;;  %v833_v2 = vpack.c.bf16 %v327_v61, %v323_v60  ;;  %v322_v3 = vld [vmem:[#allocation9 + $0x140] sm:$0xff]  ;;  %v324_v5 = vld [vmem:[#allocation9 + $0x150] sm:$0xff] }
  0x83   : > { %858 = vmatprep.subr.bf16.mxu1 %v857_v45  ;;  %v329_v63 = vld [vmem:[#allocation9 + $0x178] sm:$0xff]  ;;  %v326_v4 = vld [vmem:[#allocation9 + $0x160] sm:$0xff]  ;;  %v328_v7 = vld [vmem:[#allocation9 + $0x170] sm:$0xff] }
  0x84   : > { %v865_v6 = vpack.c.bf16 %v329_v63, %v325_v62  ;;  %v331_v9 = vld [vmem:[#allocation9 + $0x188] sm:$0xff]  ;;  %v333_v11 = vld [vmem:[#allocation9 + $0x198] sm:$0xff]  ;;  %v835_v13 = vpack.c.bf16 %v326_v4, %v322_v3  ;;  %v867_v14 = vpack.c.bf16 %v328_v7, %v324_v5  ;;  %v330_v16 = vld [vmem:[#allocation9 + $0x180] sm:$0xff] }
  0x85   : > { %828 = vmatpush1.bf16.msra.mxu0 %v827_v52  ;;  %v335_v10 = vld [vmem:[#allocation9 + $0x1a8] sm:$0xff]  ;;  %v337_v12 = vld [vmem:[#allocation9 + $0x1b8] sm:$0xff]  ;;  %v334_v17 = vld [vmem:[#allocation9 + $0x1a0] sm:$0xff] }
  0x86   : > { %860 = vmatpush1.bf16.msra.mxu1 %v859_v53  ;;  %830 = vmatprep.subr.bf16.mxu0 %v829_v54  ;;  %v837_v15 = vpack.c.bf16 %v335_v10, %v331_v9  ;;  %v332_v18 = vld [vmem:[#allocation9 + $0x190] sm:$0xff]  ;;  %v869_v19 = vpack.c.bf16 %v337_v12, %v333_v11  ;;  %v339_v21 = vld [vmem:[#allocation9 + $0x1c8] sm:$0xff]  ;;  %v341_v23 = vld [vmem:[#allocation9 + $0x1d8] sm:$0xff]  ;;  %v839_v25 = vpack.c.bf16 %v334_v17, %v330_v16 }
  0x87   : > { %862 = vmatprep.subr.bf16.mxu1 %v861_v58  ;;  %v336_v20 = vld [vmem:[#allocation9 + $0x1b0] sm:$0xff]  ;;  %v343_v22 = vld [vmem:[#allocation9 + $0x1e8] sm:$0xff]  ;;  %v345_v24 = vld [vmem:[#allocation9 + $0x1f8] sm:$0xff] }
  0x88   : > { %v871_v26 = vpack.c.bf16 %v336_v20, %v332_v18  ;;  %v841_v27 = vpack.c.bf16 %v343_v22, %v339_v21  ;;  %v338_v28 = vld [vmem:[#allocation9 + $0x1c0] sm:$0xff]  ;;  %v340_v30 = vld [vmem:[#allocation9 + $0x1d0] sm:$0xff]  ;;  %v873_v31 = vpack.c.bf16 %v345_v24, %v341_v23  ;;  %v251_v33 = vld [vmem:[#allocation7 + $0x8] sm:$0xff]  ;;  %v636_v21 = vlaneseq }
  0x89   : > { %832 = vmatpush1.bf16.msra.mxu0 %v831_v0  ;;  %v342_v29 = vld [vmem:[#allocation9 + $0x1e0] sm:$0xff]  ;;  %v344_v32 = vld [vmem:[#allocation9 + $0x1f0] sm:$0xff]  ;;  %v255_v34 = vld [vmem:[#allocation7 + $0x28] sm:$0xff] }
  0x8a   : > { %864 = vmatpush1.bf16.msra.mxu1 %v863_v1  ;;  %834 = vmatprep.subr.bf16.mxu0 %v833_v2  ;;  %v253_v35 = vld [vmem:[#allocation7 + $0x18] sm:$0xff]  ;;  %v843_v37 = vpack.c.bf16 %v342_v29, %v338_v28  ;;  %v875_v38 = vpack.c.bf16 %v344_v32, %v340_v30  ;;  %v877_v39 = vpack.c.bf16 %v255_v34, %v251_v33  ;;  %v250_v40 = vld [vmem:[#allocation7] sm:$0xff]  ;;  %v252_v42 = vld [vmem:[#allocation7 + $0x10] sm:$0xff]  ;;  %v637_v22 = vshrl.u32 %v636_v21, 7 }
  0x8b   : > { %866 = vmatprep.subr.bf16.mxu1 %v865_v6  ;;  %v257_v36 = vld [vmem:[#allocation7 + $0x38] sm:$0xff]  ;;  %v254_v41 = vld [vmem:[#allocation7 + $0x20] sm:$0xff]  ;;  %v256_v44 = vld [vmem:[#allocation7 + $0x30] sm:$0xff] }
  0x8c   : > { %v893_v43 = vpack.c.bf16 %v257_v36, %v253_v35  ;;  %v259_v45 = vld [vmem:[#allocation7 + $0x48] sm:$0xff]  ;;  %v261_v47 = vld [vmem:[#allocation7 + $0x58] sm:$0xff]  ;;  %v879_v50 = vpack.c.bf16 %v254_v41, %v250_v40  ;;  %v895_v51 = vpack.c.bf16 %v256_v44, %v252_v42  ;;  %v258_v53 = vld [vmem:[#allocation7 + $0x40] sm:$0xff]  ;;  %v638_v23 = vsub.s32 0, %v637_v22 }
  0x8d   : > { %836 = vmatpush1.bf16.msra.mxu0 %v835_v13  ;;  %v263_v46 = vld [vmem:[#allocation7 + $0x68] sm:$0xff]  ;;  %v265_v48 = vld [vmem:[#allocation7 + $0x78] sm:$0xff]  ;;  %v262_v54 = vld [vmem:[#allocation7 + $0x60] sm:$0xff]  ;;  %v650_v29 = vsub.s32 3, %v637_v22 }
  0x8e   : > { %868 = vmatpush1.bf16.msra.mxu1 %v867_v14  ;;  %838 = vmatprep.subr.bf16.mxu0 %v837_v15  ;;  %v249_v49 = vld [vmem:[#allocation2] sm:$0x3]  ;;  %v881_v52 = vpack.c.bf16 %v263_v46, %v259_v45  ;;  %v260_v55 = vld [vmem:[#allocation7 + $0x50] sm:$0xff]  ;;  %v897_v56 = vpack.c.bf16 %v265_v48, %v261_v47  ;;  %v267_v58 = vld [vmem:[#allocation7 + $0x88] sm:$0xff]  ;;  %v883_v62 = vpack.c.bf16 %v262_v54, %v258_v53 }
  0x8f   : > { %870 = vmatprep.subr.bf16.mxu1 %v869_v19  ;;  %v264_v57 = vld [vmem:[#allocation7 + $0x70] sm:$0xff]  ;;  %v271_v59 = vld [vmem:[#allocation7 + $0xa8] sm:$0xff]  ;;  %v269_v60 = vld [vmem:[#allocation7 + $0x98] sm:$0xff] }
  0x90   : > { %v273_v61 = vld [vmem:[#allocation7 + $0xb8] sm:$0xff]  ;;  %v899_v63 = vpack.c.bf16 %v264_v57, %v260_v55  ;;  %v885_v0 = vpack.c.bf16 %v271_v59, %v267_v58  ;;  %v266_v1 = vld [vmem:[#allocation7 + $0x80] sm:$0xff]  ;;  %v268_v3 = vld [vmem:[#allocation7 + $0x90] sm:$0xff] }
  0x91   : > { %840 = vmatpush1.bf16.msra.mxu0 %v839_v25  ;;  %v270_v2 = vld [vmem:[#allocation7 + $0xa0] sm:$0xff]  ;;  %v901_v4 = vpack.c.bf16 %v273_v61, %v269_v60  ;;  %v272_v5 = vld [vmem:[#allocation7 + $0xb0] sm:$0xff]  ;;  %v275_v6 = vld [vmem:[#allocation7 + $0xc8] sm:$0xff]  ;;  %v642_v25 = vsub.s32 1, %v637_v22 }
  0x92   : > { %872 = vmatpush1.bf16.msra.mxu1 %v871_v26  ;;  %842 = vmatprep.subr.bf16.mxu0 %v841_v27  ;;  %v279_v7 = vld [vmem:[#allocation7 + $0xe8] sm:$0xff]  ;;  %v277_v9 = vld [vmem:[#allocation7 + $0xd8] sm:$0xff]  ;;  %v887_v11 = vpack.c.bf16 %v270_v2, %v266_v1  ;;  %v903_v12 = vpack.c.bf16 %v272_v5, %v268_v3  ;;  %v274_v14 = vld [vmem:[#allocation7 + $0xc0] sm:$0xff] }
  0x93   : > { %874 = vmatprep.subr.bf16.mxu1 %v873_v31  ;;  %v281_v10 = vld [vmem:[#allocation7 + $0xf8] sm:$0xff]  ;;  %v889_v13 = vpack.c.bf16 %v279_v7, %v275_v6  ;;  %v278_v15 = vld [vmem:[#allocation7 + $0xe0] sm:$0xff]  ;;  %v276_v17 = vld [vmem:[#allocation7 + $0xd0] sm:$0xff] }
  0x94   : > { %v905_v16 = vpack.c.bf16 %v281_v10, %v277_v9  ;;  %v280_v18 = vld [vmem:[#allocation7 + $0xf0] sm:$0xff]  ;;  %v891_v19 = vpack.c.bf16 %v278_v15, %v274_v14  ;;  %v634_v24 = vld [vmem:[%s1431_s3] sm:$0xf] }
  0x95   : > { %844 = vmatpush1.bf16.msra.mxu0 %v843_v37  ;;  %v907_v20 = vpack.c.bf16 %v280_v18, %v276_v17  ;;  %v639_v26 = vrot.slane %v634_v24, %v638_v23  ;;  %v643_v27 = vrot.slane %v634_v24, %v642_v25  ;;  %v651_v37 = vrot.slane %v634_v24, %v650_v29 }
  0x96   : > { %876 = vmatpush1.bf16.msra.mxu1 %v875_v38  ;;  %878 = vmatprep.subr.bf16.mxu0 %v877_v39  ;;  %v646_v38 = vsub.s32 2, %v637_v22 }
  0x97   : > { %894 = vmatprep.subr.bf16.mxu1 %v893_v43 }
  0x98   : > { %411 = vmatmul.mubr.f32.vlgmr.msra.gmra.mrb[0].mxu0 %v249_v49  ;;  %v647_v40 = vrot.slane %v634_v24, %v646_v38 }
  0x99   : > { %482 = vmatmul.mubr.f32.vlgmr.msra.gmra.mrb[0].mxu1 %v249_v49  ;;  %880 = vmatpush1.bf16.msra.mxu0 %v879_v50  ;;  %v679_v49 = vld [vmem:[#allocation3] sm:$0x3] }
  0x9a   : > { %896 = vmatpush1.bf16.msra.mxu1 %v895_v51  ;;  %882 = vmatprep.subr.bf16.mxu0 %v881_v52 }
  0x9b   : > { %898 = vmatprep.subr.bf16.mxu1 %v897_v56  ;;  %556 = vmatprep.mubr.f32.mxu0 %v1164_v8 }
  0x9c   : > { %627 = vmatprep.mubr.f32.mxu1 %v1164_v8  ;;  %v248_v8 = vld [vmem:[%s1357_s8] sm:$0x3] }
  0x9d   : > { %884 = vmatpush1.bf16.msra.mxu0 %v883_v62 }
  0x9e   : > { %900 = vmatpush1.bf16.msra.mxu1 %v899_v63  ;;  %886 = vmatprep.subr.bf16.mxu0 %v885_v0 }
  0x9f   : > { %902 = vmatprep.subr.bf16.mxu1 %v901_v4 }
  0xa1   : > { %888 = vmatpush1.bf16.msra.mxu0 %v887_v11 }
  0xa2   : > { %904 = vmatpush1.bf16.msra.mxu1 %v903_v12  ;;  %890 = vmatprep.subr.bf16.mxu0 %v889_v13 }
  0xa3   : > { %906 = vmatprep.subr.bf16.mxu1 %v905_v16 }
  0xa5   : > { %892 = vmatpush1.bf16.msra.mxu0 %v891_v19 }
  0xa6   : > { %908 = vmatpush1.bf16.msra.mxu1 %v907_v20 }
  0xa8   : > { %804 = vmatmul.mubr.msk.f32.vlgmr.msra.gmra.mrb[0].mxu0 %vm488_vm0, %v248_v8 }
  0xa9   : > { %805 = vmatmul.mubr.msk.f32.vlgmr.msra.gmra.mrb[0].mxu1 %vm488_vm0, %v248_v8 }
 0x17b   : > { %v558_v28 = vpop.f32.mrb[0].mxu0 }
 0x17c   : > { %v656_v30 = vadd.f32 %v639_v26, %v558_v28  ;;  %v629_v31 = vpop.f32.mrb[0].mxu1  ;;  %v560_v32 = vpop.f32.mrb[1].mxu0 }
 0x17d   : > { %v657_v33 = vadd.f32 %v643_v27, %v560_v32  ;;  %v631_v34 = vpop.f32.mrb[1].mxu1  ;;  %v658_v42 = vadd.f32 %v647_v40, %v629_v31 }
 0x17e   : > { %v806_v35 = vmul.f32 -1.442695, %v656_v30  ;;  %v659_v39 = vadd.f32 %v651_v37, %v631_v34 }
 0x17f   : > { %v807_v36 = vmul.f32 -1.442695, %v657_v33 }
 0x180   : > { %984 = vpow2.f32 %v806_v35  ;;  %v808_v41 = vmul.f32 -1.442695, %v659_v39 }
 0x181   : > { %986 = vpow2.f32 %v807_v36 }
 0x182   : > { %988 = vpow2.f32 %v808_v41 }
 0x183   : > { %990 = vtanh.f32 %v658_v42 }
 0x18a   : > { %v985_v43 = vpop.eup %984 }
 0x18b   : > { %v987_v44 = vpop.eup %986  ;;  %v663_v45 = vadd.f32 1.0, %v985_v43 }
 0x18c   : > { %v669_v46 = vadd.f32 1.0, %v987_v44  ;;  %v989_v47 = vpop.eup %988 }
 0x18d   : > { %992 = vrcp.f32 %v663_v45  ;;  %v991_v48 = vpop.eup %990  ;;  %v676_v53 = vadd.f32 1.0, %v989_v47 }
 0x18e   : > { %994 = vrcp.f32 %v669_v46 }
 0x18f   : > { %996 = vrcp.f32 %v676_v53 }
 0x197   : > { %v993_v50 = vpop.eup %992 }
 0x198   : > { %v995_v51 = vpop.eup %994  ;;  %v681_v52 = vmul.f32 %v993_v50, %v991_v48 }
 0x199   : > { %v680_v54 = vmul.f32 %v995_v51, %v679_v49  ;;  %v997_v56 = vpop.eup %996 }
 0x19b   : > { %v682_v55 = vadd.f32 %v681_v52, %v680_v54 }
 0x19d   : > { %685 = vst [vmem:[#allocation3] sm:$0x3] %v682_v55  ;;  %998 = vtanh.f32 %v682_v55 }
 0x1a7   : > { %v999_v57 = vpop.eup %998 }
 0x1a8   : > { %v684_v58 = vmul.f32 %v999_v57, %v997_v56 }
 0x1aa   : > { %686 = vst [vmem:[#allocation2] sm:$0x3] %v684_v58  ;;  %687 = vst [vmem:[%s1367_s23] sm:$0x3] %v684_v58 }
 0x1ab   : > { %1099 = shalt.err (!%p1096_p10)
}
 0x1ac   : > { %s1100_s12 = scalar_lea.hbm %s1384_s10, 32  ;;  %s1104_s7 = scalar_lea.hbm %s1432_s4, 256 }
 0x1ad   : > { %p1101_p13 = scmp.ne.s32.totalorder %s1384_s10, %s1100_s12  ;;  %p1105_p11 = scmp.lt.u32.totalorder %s1384_s10, %s1432_s4 }
 0x1ae   : > { %p1106_p8 = scmp.lt.u32.totalorder %s1104_s7, %s1100_s12  ;;  %p1108_p2 = scmp.lt.u32.totalorder %s1100_s12, %s1384_s10 }
 0x1af   : > { %p1102_p5 = pnand %p1101_p13, %p1304_p4 }
 0x1b0   : > { %p1107_p1 = por %p1106_p8, %p1105_p11 }
 0x1b1   : > { %p1103_p0 = pneg %p1102_p5 }
 0x1b2   : > { %p1109_p6 = por %p1108_p2, %p1107_p1 }
 0x1b4   : > { %p1110_p9 = pnand %p1109_p6, %p1103_p0 }
 0x1b6   : > { %1113 = shalt.err (!%p1110_p9)
}
 0x1b7   : > { %923 = dma.vmem_to_hbm [thread:$0]  (%p1304_p4), %s1386_s5, 32, %s1384_s10, %s689_s24  }
 0x1b8 PF: > { %p945_p12 = scmp.ge.s32.totalorder %s1156_s18, 2  ;;  %s714_s21 = sand.u32 1, %s1144_s15  }
 0x1b9   : > { %p1448_p3 = scmp.ne.s32.totalorder %s1437_s22, 0  ;;  %s715_s27 = scalar_lea.sflag [#allocation6], %s714_s21 }
 0x1bb   : > { %p937_p7 = pnand %p945_p12, %p1448_p3 }
 0x1bd   : > { %1139 = dma.done.wait (!%p937_p7), %s715_s27, 32  }
 0x1be   : > { %1141 = vsyncadd (!%p937_p7), %s715_s27, 4294967264  ;;  %p18_p10 = scmp.ge.s32.totalorder %s1294_s9, 10   ;;  %s1449_s15 = smov %s1148_s16 }
 0x1bf   : > { %s1450_s16 = smov %s1152_s17  ;;  %s1451_s17 = smov %s1310_s14 }
 0x1c0   : > { %s1452_s18 = smov %s1294_s9  ;;  %20 = sbr.rel (!%p18_p10) target bundleno = 6 (0x6), region = 93 }
 0x1c7   :  { %720 = vsyncpa [#allocation5], 1 }
 0x1c8   :  { %722 = vsyncpa [#allocation5 + $0x1], 1 }
 0x1c9   :  { %723 = vsyncpa [#allocation8], 1 }
 0x1ca   :  { %724 = vsyncpa [#allocation6], 1 }
 0x1cb   :  { %726 = vsyncpa [#allocation6 + $0x1], 1 }

</bundles_post_ra>
